<compile_context>
chip_gen: v5e
topology: v5e:2x2
jax: 0.10.0
libtpu: 0.0.40
codegen_flags: <defaults>
</compile_context>

<pallas_src>
import functools

import jax
import jax.numpy as jnp
from jax.experimental import pallas as pl
from jax.experimental.pallas import tpu as pltpu


def _round_up(n: int, m: int) -> int:
    return ((n + m - 1) // m) * m


# --------------------------------------------------------------------------- #
# Kernel
# --------------------------------------------------------------------------- #
def _mlp_kernel(*refs, relu_flags, compute_dtype):
    """Fused MLP forward for one batch tile.

    refs = (x_ref, w0_ref, b0_ref, w1_ref, b1_ref, ..., o_ref)
    relu_flags[i] == True  => apply ReLU to the activation feeding Linear_i.
    """
    x_ref = refs[0]
    o_ref = refs[-1]
    param_refs = refs[1:-1]
    num_layers = len(param_refs) // 2

    h = x_ref[...]
    if h.dtype != jnp.float32:
        h = h.astype(jnp.float32)

    for i in range(num_layers):
        w_ref = param_refs[2 * i]
        b_ref = param_refs[2 * i + 1]
        if relu_flags[i]:
            h = jnp.maximum(h, 0.0)               # f32 elementwise on the VPU
        # bf16 operands -> native MXU rate; f32 accumulation for accuracy.
        h = jnp.dot(h.astype(compute_dtype), w_ref[...],
                    preferred_element_type=jnp.float32)
        h = h + b_ref[...]                        # f32 bias broadcast over rows

    o_ref[...] = h.astype(o_ref.dtype)


# --------------------------------------------------------------------------- #
# One-time parameter preparation (weight-stationary: do NOT redo per forward)
# --------------------------------------------------------------------------- #
def prepare_mlp_params(weights, biases, final_relu=False,
                       compute_dtype=jnp.bfloat16):
    """Transpose to (D_in, D_out), zero-pad feature dims to multiples of 128,
    cast weights to the MXU compute dtype, keep biases in f32.
    Zero padding is semantics-preserving: padded input features are zero and
    padded weight rows/cols and bias entries are zero."""
    padded_w, padded_b = [], []
    for w, b in zip(weights, biases):
        w = jnp.asarray(w, jnp.float32)
        b = jnp.asarray(b, jnp.float32)
        d_out, d_in = w.shape
        pi, po = _round_up(d_in, 128), _round_up(d_out, 128)
        wt = jnp.zeros((pi, po), compute_dtype)
        wt = wt.at[:d_in, :d_out].set(w.T.astype(compute_dtype))
        bp = jnp.zeros((1, po), jnp.float32)
        bp = bp.at[0, :d_out].set(b)
        padded_w.append(wt)
        padded_b.append(bp)

    num_layers = len(weights)
    final_relu_layer = num_layers if final_relu else num_layers - 1
    relu_flags = tuple(i < final_relu_layer for i in range(num_layers))
    return padded_w, padded_b, relu_flags


# --------------------------------------------------------------------------- #
# Forward wrapper
# --------------------------------------------------------------------------- #
@functools.partial(jax.jit,
                   static_argnames=("relu_flags", "out_features", "tile_b"))
def mlp_forward(x, padded_weights, padded_biases, *,
                relu_flags, out_features, tile_b=512):
    """x: [B, D0] float32.  padded_weights[i]: (P_in_i, P_out_i) bf16,
    padded_biases[i]: (1, P_out_i) f32 (from prepare_mlp_params)."""
    B, D0 = x.shape
    d_in_p = padded_weights[0].shape[0]
    d_out_p = padded_weights[-1].shape[1]
    compute_dtype = padded_weights[0].dtype

    # Batch tiling: largest of (tile_b, rounded-up B); rows padded with zeros.
    tile_rows = max(8, min(tile_b, _round_up(B, 8)))
    b_padded = _round_up(B, tile_rows)

    xp = jnp.zeros((b_padded, d_in_p), jnp.float32)
    xp = xp.at[:B, :D0].set(x.astype(jnp.float32))

    grid = (pl.cdiv(b_padded, tile_rows),)

    in_specs = [pl.BlockSpec((tile_rows, d_in_p), lambda i: (i, 0))]
    args = [xp]
    for w, b in zip(padded_weights, padded_biases):
        args.append(w)
        # Constant block index -> weight/bias stay resident in VMEM.
        in_specs.append(pl.BlockSpec(w.shape, lambda i: (0, 0)))
        args.append(b)
        in_specs.append(pl.BlockSpec(b.shape, lambda i: (0, 0)))

    out_spec = pl.BlockSpec((tile_rows, d_out_p), lambda i: (i, 0))
    out_shape = jax.ShapeDtypeStruct((b_padded, d_out_p), jnp.float32)

    kernel = functools.partial(_mlp_kernel,
                               relu_flags=relu_flags,
                               compute_dtype=compute_dtype)

    y = pl.pallas_call(
        kernel,
        grid=grid,
        out_shape=out_shape,
        in_specs=in_specs,
        out_specs=out_spec,
        compiler_params=pltpu.CompilerParams(
            # batch tiles are independent -> shard across TCs on v7x.
            dimension_semantics=("parallel",),
        ),
    )(*args)

    return y[:B, :out_features]


# --------------------------------------------------------------------------- #
# Pure-JAX references
# --------------------------------------------------------------------------- #
def mlp_reference(x, weights, biases, final_relu=False):
    """f32 reference matching the PyTorch module exactly."""
    num_layers = len(weights)
    final_relu_layer = num_layers if final_relu else num_layers - 1
    h = x
    for i, (w, b) in enumerate(zip(weights, biases)):
        if i < final_relu_layer:
            h = jnp.maximum(h, 0.0)
        h = h @ w.T + b
    return h


def mlp_reference_mixed(x, weights, biases, final_relu=False):
    """Reference that mirrors the kernel's numerics (bf16 dot operands,
    f32 accumulation, f32 bias/ReLU)."""
    num_layers = len(weights)
    final_relu_layer = num_layers if final_relu else num_layers - 1
    h = x.astype(jnp.float32)
    for i, (w, b) in enumerate(zip(weights, biases)):
        if i < final_relu_layer:
            h = jnp.maximum(h, 0.0)
        h = jnp.dot(h.astype(jnp.bfloat16),
                    jnp.asarray(w, jnp.float32).T.astype(jnp.bfloat16),
                    preferred_element_type=jnp.float32) + b
    return h


# --------------------------------------------------------------------------- #
# Test
# --------------------------------------------------------------------------- #
if __name__ == "__main__":
    # Small shapes implied by the module: MLP([32, 64, 48, 16]), batch=8.
    layer_sizes = [32, 64, 48, 16]
    batch = 8
    final_relu = False

    key = jax.random.PRNGKey(0)
    key, kx = jax.random.split(key)
    x = jax.random.normal(kx, (batch, layer_sizes[0]), dtype=jnp.float32)

    weights, biases = [], []
    for i in range(len(layer_sizes) - 1):
        d_in, d_out = layer_sizes[i], layer_sizes[i + 1]
        key, kw, kb = jax.random.split(key, 3)
        bound = 1.0 / (d_in ** 0.5)   # nn.Linear default init range
        weights.append(jax.random.uniform(kw, (d_out, d_in), jnp.float32,
                                          minval=-bound, maxval=bound))
        biases.append(jax.random.uniform(kb, (d_out,), jnp.float32,
                                         minval=-bound, maxval=bound))

    # One-time parameter prep (transpose + pad + bf16 cast).
    pw, pb, relu_flags = prepare_mlp_params(weights, biases,
                                            final_relu=final_relu)

    out = mlp_forward(x, pw, pb,
                      relu_flags=relu_flags,
                      out_features=layer_sizes[-1])
    out = jax.block_until_ready(out)
    assert out.shape == (batch, layer_sizes[-1])

    # Tight check vs a reference with identical mixed-precision numerics.
    ref_mixed = mlp_reference_mixed(x, weights, biases, final_relu=final_relu)
    assert jnp.allclose(out, ref_mixed, atol=1e-4, rtol=1e-4), \
        "mismatch vs mixed-precision reference"

    # Semantic check vs the pure-f32 PyTorch-equivalent reference
    # (looser tolerance accounts for bf16 matmul operands).
    ref_f32 = mlp_reference(x, weights, biases, final_relu=final_relu)
    assert jnp.allclose(out, ref_f32, atol=5e-2, rtol=5e-2), \
        "mismatch vs f32 reference"

    print("KERNEL_OK")
</pallas_src>

<mosaic_0001>
module attributes {stable_mosaic.version = 11 : i64} {
  func.func @_mlp_kernel(%arg0: i32, %arg1: memref<8x128xf32, #tpu.memory_space<vmem>>, %arg2: memref<128x128xbf16, #tpu.memory_space<vmem>>, %arg3: memref<1x128xf32, #tpu.memory_space<vmem>>, %arg4: memref<128x128xbf16, #tpu.memory_space<vmem>>, %arg5: memref<1x128xf32, #tpu.memory_space<vmem>>, %arg6: memref<128x128xbf16, #tpu.memory_space<vmem>>, %arg7: memref<1x128xf32, #tpu.memory_space<vmem>>, %arg8: memref<8x128xf32, #tpu.memory_space<vmem>>) attributes {dimension_semantics = [#tpu.dimension_semantics<parallel>], iteration_bounds = array<i64: 1>, scalar_prefetch = 0 : i64, scratch_operands = 0 : i64, tpu.core_type = #tpu.core_type<tc>, window_params = [{transform_indices = @transform_0, window_bounds = array<i64: 8, 128>}, {pipeline_mode = #tpu.pipeline_mode<synchronous>, transform_indices = @transform_1, window_bounds = array<i64: 128, 128>}, {pipeline_mode = #tpu.pipeline_mode<synchronous>, transform_indices = @transform_2, window_bounds = array<i64: 1, 128>}, {pipeline_mode = #tpu.pipeline_mode<synchronous>, transform_indices = @transform_3, window_bounds = array<i64: 128, 128>}, {pipeline_mode = #tpu.pipeline_mode<synchronous>, transform_indices = @transform_4, window_bounds = array<i64: 1, 128>}, {pipeline_mode = #tpu.pipeline_mode<synchronous>, transform_indices = @transform_5, window_bounds = array<i64: 128, 128>}, {pipeline_mode = #tpu.pipeline_mode<synchronous>, transform_indices = @transform_6, window_bounds = array<i64: 1, 128>}, {transform_indices = @transform_7, window_bounds = array<i64: 8, 128>}]} {
    %c0 = arith.constant 0 : index
    %c0_0 = arith.constant 0 : index
    %0 = vector.load %arg1[%c0, %c0_0] : memref<8x128xf32, #tpu.memory_space<vmem>>, vector<8x128xf32>
    %cst = arith.constant 0.000000e+00 : f32
    %1 = vector.broadcast %cst : f32 to vector<8x128xf32>
    %2 = arith.maximumf %0, %1 : vector<8x128xf32>
    %3 = arith.truncf %2 : vector<8x128xf32> to vector<8x128xbf16>
    %c0_1 = arith.constant 0 : index
    %c0_2 = arith.constant 0 : index
    %4 = vector.load %arg2[%c0_1, %c0_2] : memref<128x128xbf16, #tpu.memory_space<vmem>>, vector<128x128xbf16>
    %cst_3 = arith.constant dense<0.000000e+00> : vector<8x128xf32>
    %5 = tpu.matmul %3, %4, %cst_3 {dimension_numbers = #tpu.dot_dimension_numbers<[1], [0], [0], [1], [0, 0, 1, 1], [], []>} : vector<8x128xbf16>, vector<128x128xbf16>, vector<8x128xf32> -> vector<8x128xf32>
    %c0_4 = arith.constant 0 : index
    %c0_5 = arith.constant 0 : index
    %6 = vector.load %arg3[%c0_4, %c0_5] : memref<1x128xf32, #tpu.memory_space<vmem>>, vector<1x128xf32>
    %7 = vector.broadcast %6 : vector<1x128xf32> to vector<8x128xf32>
    %8 = arith.addf %5, %7 : vector<8x128xf32>
    %cst_6 = arith.constant 0.000000e+00 : f32
    %9 = vector.broadcast %cst_6 : f32 to vector<8x128xf32>
    %10 = arith.maximumf %8, %9 : vector<8x128xf32>
    %11 = arith.truncf %10 : vector<8x128xf32> to vector<8x128xbf16>
    %c0_7 = arith.constant 0 : index
    %c0_8 = arith.constant 0 : index
    %12 = vector.load %arg4[%c0_7, %c0_8] : memref<128x128xbf16, #tpu.memory_space<vmem>>, vector<128x128xbf16>
    %cst_9 = arith.constant dense<0.000000e+00> : vector<8x128xf32>
    %13 = tpu.matmul %11, %12, %cst_9 {dimension_numbers = #tpu.dot_dimension_numbers<[1], [0], [0], [1], [0, 0, 1, 1], [], []>} : vector<8x128xbf16>, vector<128x128xbf16>, vector<8x128xf32> -> vector<8x128xf32>
    %c0_10 = arith.constant 0 : index
    %c0_11 = arith.constant 0 : index
    %14 = vector.load %arg5[%c0_10, %c0_11] : memref<1x128xf32, #tpu.memory_space<vmem>>, vector<1x128xf32>
    %15 = vector.broadcast %14 : vector<1x128xf32> to vector<8x128xf32>
    %16 = arith.addf %13, %15 : vector<8x128xf32>
    %17 = arith.truncf %16 : vector<8x128xf32> to vector<8x128xbf16>
    %c0_12 = arith.constant 0 : index
    %c0_13 = arith.constant 0 : index
    %18 = vector.load %arg6[%c0_12, %c0_13] : memref<128x128xbf16, #tpu.memory_space<vmem>>, vector<128x128xbf16>
    %cst_14 = arith.constant dense<0.000000e+00> : vector<8x128xf32>
    %19 = tpu.matmul %17, %18, %cst_14 {dimension_numbers = #tpu.dot_dimension_numbers<[1], [0], [0], [1], [0, 0, 1, 1], [], []>} : vector<8x128xbf16>, vector<128x128xbf16>, vector<8x128xf32> -> vector<8x128xf32>
    %c0_15 = arith.constant 0 : index
    %c0_16 = arith.constant 0 : index
    %20 = vector.load %arg7[%c0_15, %c0_16] : memref<1x128xf32, #tpu.memory_space<vmem>>, vector<1x128xf32>
    %21 = vector.broadcast %20 : vector<1x128xf32> to vector<8x128xf32>
    %22 = arith.addf %19, %21 : vector<8x128xf32>
    %c0_17 = arith.constant 0 : index
    %c0_18 = arith.constant 0 : index
    %23 = vector.load %arg8[%c0_17, %c0_18] : memref<8x128xf32, #tpu.memory_space<vmem>>, vector<8x128xf32>
    tpu.vector_store %arg8[%c0_17, %c0_18], %22 {strides = array<i32>} : memref<8x128xf32, #tpu.memory_space<vmem>>, vector<8x128xf32>,
    return
  }
  func.func @transform_0(%arg0: i32) -> (i32, i32) {
    %c0_i32 = arith.constant 0 : i32
    %c0_i32_0 = arith.constant 0 : i32
    return %arg0, %c0_i32 : i32, i32
  }
  func.func @transform_1(%arg0: i32) -> (i32, i32) {
    %c0_i32 = arith.constant 0 : i32
    %c0_i32_0 = arith.constant 0 : i32
    %c0_i32_1 = arith.constant 0 : i32
    return %c0_i32, %c0_i32_0 : i32, i32
  }
  func.func @transform_2(%arg0: i32) -> (i32, i32) {
    %c0_i32 = arith.constant 0 : i32
    %c0_i32_0 = arith.constant 0 : i32
    %c0_i32_1 = arith.constant 0 : i32
    return %c0_i32, %c0_i32_0 : i32, i32
  }
  func.func @transform_3(%arg0: i32) -> (i32, i32) {
    %c0_i32 = arith.constant 0 : i32
    %c0_i32_0 = arith.constant 0 : i32
    %c0_i32_1 = arith.constant 0 : i32
    return %c0_i32, %c0_i32_0 : i32, i32
  }
  func.func @transform_4(%arg0: i32) -> (i32, i32) {
    %c0_i32 = arith.constant 0 : i32
    %c0_i32_0 = arith.constant 0 : i32
    %c0_i32_1 = arith.constant 0 : i32
    return %c0_i32, %c0_i32_0 : i32, i32
  }
  func.func @transform_5(%arg0: i32) -> (i32, i32) {
    %c0_i32 = arith.constant 0 : i32
    %c0_i32_0 = arith.constant 0 : i32
    %c0_i32_1 = arith.constant 0 : i32
    return %c0_i32, %c0_i32_0 : i32, i32
  }
  func.func @transform_6(%arg0: i32) -> (i32, i32) {
    %c0_i32 = arith.constant 0 : i32
    %c0_i32_0 = arith.constant 0 : i32
    %c0_i32_1 = arith.constant 0 : i32
    return %c0_i32, %c0_i32_0 : i32, i32
  }
  func.func @transform_7(%arg0: i32) -> (i32, i32) {
    %c0_i32 = arith.constant 0 : i32
    %c0_i32_0 = arith.constant 0 : i32
    return %arg0, %c0_i32 : i32, i32
  }
}

</mosaic_0001>

<bundles_post_ra>
// kernel: mlp_forward.1
= control target key start
LH: loop header
LB: loop body
LE: loop exit
PB: predicated region body
PF: predicated region fallthrough
CT: control target
= control target key end

     0   :  { %12 = vsyncpa [#allocation3], 0  ;;  %s643_s0 = inlined_call_operand.vmem [shape: f32[8,128], index: 0, kind: input, shape index: {}]   ;;  %s644_s1 = inlined_call_operand.hbm [shape: bf16[128,128], index: 1, kind: input, shape index: {}]   ;;  %s645_s2 = inlined_call_operand.vmem [shape: f32[1,128], index: 2, kind: input, shape index: {}]   ;;  %s646_s3 = inlined_call_operand.hbm [shape: bf16[128,128], index: 3, kind: input, shape index: {}]   ;;  %s647_s4 = inlined_call_operand.vmem [shape: f32[1,128], index: 4, kind: input, shape index: {}]   ;;  %s648_s5 = inlined_call_operand.hbm [shape: bf16[128,128], index: 5, kind: input, shape index: {}]   ;;  %s649_s6 = inlined_call_operand.vmem [shape: f32[1,128], index: 6, kind: input, shape index: {}]   ;;  %s650_s7 = inlined_call_operand.hbm [shape: f32[8,128], index: 7, kind: output, shape index: {}]  }
   0x1   :  { %13 = vsyncpa [#allocation6], 0 }
   0x2   :  { %14 = vsyncpa [#allocation4], 0  ;;  %s36_s26 = sshll.u32 %s646_s3, 4  ;;  %s573_s27 = smov [#allocation5]   ;;  %s37_s26 = int_to_ptr.hbm [resolvable:$true] %s36_s26 }
   0x3   :  { %s38_s28 = sshll.u32 %s573_s27, 4  ;;  %s21_s8 = sshll.u32 %s644_s1, 4  ;;  %s39_s28 = int_to_ptr.vmem [resolvable:$true] %s38_s28  ;;  %s22_s8 = int_to_ptr.hbm [resolvable:$true] %s21_s8 }
   0x4   :  { %s574_s9 = smov 64   ;;  %s575_s10 = smov 4  }
   0x5   :  { %44 = dma.hbm_to_vmem [thread:$0]  %s37_s26, 1024, %s39_s28, [#allocation6], %s574_s9, %s574_s9, %s575_s10  }
   0x6   :  { %s576_s11 = smov [#allocation2]   ;;  %s51_s15 = sshll.u32 %s648_s5, 4  ;;  %s52_s15 = int_to_ptr.hbm [resolvable:$true] %s51_s15 }
   0x7   :  { %s23_s12 = sshll.u32 %s576_s11, 4  ;;  %s577_s3 = smov [#allocation7]   ;;  %s24_s12 = int_to_ptr.vmem [resolvable:$true] %s23_s12 }
   0x8   :  { %29 = dma.hbm_to_vmem [thread:$0]  %s22_s8, 1024, %s24_s12, [#allocation3], %s574_s9, %s574_s9, %s575_s10  }
   0x9   :  { %s53_s16 = sshll.u32 %s577_s3, 4  ;;  %s54_s16 = int_to_ptr.vmem [resolvable:$true] %s53_s16 }
   0xa   :  { %59 = dma.hbm_to_vmem [thread:$0]  %s52_s15, 1024, %s54_s16, [#allocation6], %s574_s9, %s574_s9, %s575_s10  }
   0xb   :  { %567 = dma.done.wait [#allocation3], 1024  }
   0xc   :  { %568 = vsyncadd [#allocation3], 4294966272 }
   0xd   :  { %569 = dma.done.wait [#allocation6], 2048  }
   0xe   :  { %570 = vsyncadd [#allocation6], 4294965248  ;;  %v445_v0 = vld [vmem:[#allocation2 + $0x38] sm:$0xff]  ;;  %v444_v1 = vld [vmem:[#allocation2 + $0x30] sm:$0xff]  ;;  %s578_s21 = smov [#allocation8]   ;;  %s331_s25 = sshll.u32 %s650_s7, 4  ;;  %s332_s25 = int_to_ptr.hbm [resolvable:$true] %s331_s25 }
   0xf   :  { %145 = vmatpush.bf16.msra.mxu0 %v445_v0  ;;  %v453_v2 = vld [vmem:[#allocation5 + $0x38] sm:$0xff]  ;;  %v452_v3 = vld [vmem:[#allocation5 + $0x30] sm:$0xff]  ;;  %v443_v4 = vld [vmem:[#allocation2 + $0x28] sm:$0xff]  ;;  %s329_s22 = sshll.u32 %s578_s21, 4  ;;  %s330_s22 = int_to_ptr.vmem [resolvable:$true] %s329_s22 }
  0x10   :  { %228 = vmatpush.bf16.msra.mxu1 %v453_v2  ;;  %v451_v5 = vld [vmem:[#allocation5 + $0x28] sm:$0xff]  ;;  %v442_v6 = vld [vmem:[#allocation2 + $0x20] sm:$0xff]  ;;  %v441_v8 = vld [vmem:[#allocation2 + $0x18] sm:$0xff] }
  0x11   :  { %v450_v7 = vld [vmem:[#allocation5 + $0x20] sm:$0xff]  ;;  %v449_v9 = vld [vmem:[#allocation5 + $0x18] sm:$0xff]  ;;  %v440_v10 = vld [vmem:[#allocation2 + $0x10] sm:$0xff] }
  0x12   :  { %v448_v11 = vld [vmem:[#allocation5 + $0x10] sm:$0xff]  ;;  %v439_v12 = vld [vmem:[#allocation2 + $0x8] sm:$0xff]  ;;  %v74_v13 = vld [vmem:[%s643_s0] sm:$0xff] }
  0x13   :  { %146 = vmatpush.bf16.msra.mxu0 %v444_v1  ;;  %v75_v14 = vmax.f32 %v74_v13, 0.0  ;;  %v438_v15 = vld [vmem:[#allocation2] sm:$0xff]  ;;  %v447_v17 = vld [vmem:[#allocation5 + $0x8] sm:$0xff]  ;;  %v461_v19 = vld [vmem:[#allocation7 + $0x38] sm:$0xff] }
  0x14   :  { %229 = vmatpush.bf16.msra.mxu1 %v452_v3  ;;  %v446_v18 = vld [vmem:[#allocation5] sm:$0xff]  ;;  %310 = vmatpush.bf16.msra.mxu2 %v461_v19  ;;  %v460_v20 = vld [vmem:[#allocation7 + $0x30] sm:$0xff]  ;;  %v459_v21 = vld [vmem:[#allocation7 + $0x28] sm:$0xff] }
  0x15   :  { %v76_v16 = vpack.c.bf16 %v75_v14, %v75_v14  ;;  %v458_v22 = vld [vmem:[#allocation7 + $0x20] sm:$0xff]  ;;  %v457_v23 = vld [vmem:[#allocation7 + $0x18] sm:$0xff]  ;;  %v456_v24 = vld [vmem:[#allocation7 + $0x10] sm:$0xff] }
  0x16   :  { %v468_v25 = vld [vmem:[%s645_s2] ss:$0 sm:$0xff]  ;;  %v455_v26 = vld [vmem:[#allocation7 + $0x8] sm:$0xff] }
  0x17   :  { %147 = vmatpush.bf16.msra.mxu0 %v443_v4  ;;  %v454_v32 = vld [vmem:[#allocation7] sm:$0xff] }
  0x18   :  { %230 = vmatpush.bf16.msra.mxu1 %v451_v5  ;;  %311 = vmatpush.bf16.msra.mxu2 %v460_v20  ;;  %v469_v33 = vld [vmem:[%s647_s4] ss:$0 sm:$0xff] }
  0x19   :  { %v470_v38 = vld [vmem:[%s649_s6] ss:$0 sm:$0xff] }
  0x1b   :  { %148 = vmatpush.bf16.msra.mxu0 %v442_v6 }
  0x1c   :  { %231 = vmatpush.bf16.msra.mxu1 %v450_v7  ;;  %312 = vmatpush.bf16.msra.mxu2 %v459_v21 }
  0x1f   :  { %149 = vmatpush.bf16.msra.mxu0 %v441_v8 }
  0x20   :  { %232 = vmatpush.bf16.msra.mxu1 %v449_v9  ;;  %313 = vmatpush.bf16.msra.mxu2 %v458_v22 }
  0x23   :  { %150 = vmatpush.bf16.msra.mxu0 %v440_v10 }
  0x24   :  { %233 = vmatpush.bf16.msra.mxu1 %v448_v11  ;;  %314 = vmatpush.bf16.msra.mxu2 %v457_v23 }
  0x27   :  { %151 = vmatpush.bf16.msra.mxu0 %v439_v12 }
  0x28   :  { %234 = vmatpush.bf16.msra.mxu1 %v447_v17  ;;  %315 = vmatpush.bf16.msra.mxu2 %v456_v24 }
  0x2b   :  { %152 = vmatpush.bf16.msra.mxu0 %v438_v15 }
  0x2c   :  { %235 = vmatpush.bf16.msra.mxu1 %v446_v18  ;;  %316 = vmatpush.bf16.msra.mxu2 %v455_v26 }
  0x2e   :  { %153 = vmatmul.bf16.vlgmr.msra.gmra.mxu0 %v76_v16 }
  0x30   :  { %317 = vmatpush.bf16.msra.mxu2 %v454_v32 }
  0xab   :  { %v154_v27 = vpop.f32.mrf.mxu0 }
  0xac   :  { %v155_v28 = vadd.f32 %v468_v25, %v154_v27 }
  0xae   :  { %v158_v29 = vmax.f32 %v155_v28, 0.0 }
  0xb0   :  { %v159_v30 = vpack.c.bf16 %v158_v29, %v158_v29 }
  0xb2   :  { %236 = vmatmul.bf16.vlgmr.msra.gmra.mxu1 %v159_v30 }
  0xb3   :  { %v156_v31 = vpop.f32.mrf.mxu0 }
 0x12f   :  { %v237_v34 = vpop.f32.mrf.mxu1 }
 0x130   :  { %v238_v35 = vadd.f32 %v469_v33, %v237_v34 }
 0x132   :  { %v241_v36 = vpack.c.bf16 %v238_v35, %v238_v35 }
 0x134   :  { %318 = vmatmul.bf16.vlgmr.msra.gmra.mxu2 %v241_v36 }
 0x137   :  { %v239_v37 = vpop.f32.mrf.mxu1 }
 0x1b7   :  { %v319_v39 = vpop.f32.mrf.mxu2 }
 0x1b8   :  { %v320_v40 = vadd.f32 %v470_v38, %v319_v39 }
 0x1ba   :  { %323 = vst [vmem:[#allocation8] sm:$0xff] %v320_v40 }
 0x1bb   :  { %334 = dma.vmem_to_hbm [thread:$0]  %s330_s22, 128, %s332_s25, [#allocation4]  }
 0x1bf   :  { %v321_v41 = vpop.f32.mrf.mxu2 }
 0x1c0   :  { %571 = dma.done.wait [#allocation4], 128  }
 0x1c1   :  { %572 = vsyncadd [#allocation4], 4294967168 }
 0x1c2   :  { %339 = vsyncpa [#allocation3], 1 }
 0x1c3   :  { %340 = vsyncpa [#allocation6], 1 }
 0x1c4   :  { %341 = vsyncpa [#allocation4], 1 }

</bundles_post_ra>
